<compile_context>
chip_gen: v7x
topology: tpu7x:2x2x1
jax: 0.10.0
libtpu: 0.0.40
codegen_flags: <defaults>
</compile_context>

<pallas_src>
import functools

import numpy as np
import jax
import jax.numpy as jnp
from jax.experimental import pallas as pl
from jax.experimental.pallas import tpu as pltpu


# ----------------------------------------------------------------------------
# Parameter helpers (deterministic, in-script)
# ----------------------------------------------------------------------------
def create_sinusoidal_embeddings(n_pos: int, dim: int) -> jnp.ndarray:
    """Same math as the PyTorch helper; returns (n_pos, dim) float32 table."""
    position_enc = np.array(
        [[pos / np.power(10000, 2 * (j // 2) / dim) for j in range(dim)]
         for pos in range(n_pos)]
    )
    out = np.zeros((n_pos, dim), dtype=np.float32)
    out[:, 0::2] = np.sin(position_enc[:, 0::2])
    out[:, 1::2] = np.cos(position_enc[:, 1::2])
    return jnp.asarray(out)


def prepare_params(conv_weight, conv_bias, cls_token, pos_table,
                   num_prefix_tokens: int):
    """One-time prep: flatten/transpose conv weight, fold bias into pos table."""
    hidden = conv_weight.shape[0]
    K = int(np.prod(conv_weight.shape[1:]))            # C * P * P
    w = conv_weight.reshape(hidden, K).T               # (K, hidden) — matches patch flatten
    # Fold the conv bias into the patch rows of the position table: the kernel
    # epilogue becomes a single add (one fewer input stream / resident buffer).
    pos_patch = pos_table[num_prefix_tokens:] + conv_bias[None, :]   # (Np, hidden)
    pos_prefix = pos_table[:num_prefix_tokens]                        # (prefix, hidden)
    return {
        "w": w,
        "pos_patch": pos_patch,
        "pos_prefix": pos_prefix,
        "cls_token": cls_token,
    }


# ----------------------------------------------------------------------------
# VMEM budgeting / tile selection
# ----------------------------------------------------------------------------
def _vmem_estimate_bytes(tile_np, K, hidden, x_itemsize, w_itemsize):
    w = 2 * K * hidden * w_itemsize        # weight (constant block index, 2 bufs allocated)
    x = 2 * tile_np * K * x_itemsize       # double-buffered patch tile
    p = 2 * tile_np * hidden * 4           # pos(+bias) tile, f32
    o = 2 * tile_np * hidden * 4           # output tile, f32
    return w + x + p + o


def _pick_tile_np(num_patches, K, hidden, x_itemsize, w_itemsize,
                  budget_bytes=22 * 1024 * 1024):
    """Largest row tile (<=512) that fits the VMEM budget; keeps the sublane
    dim a multiple of 8 (or equal to the full patch axis) per the (8,128) rule."""
    tile = min(num_patches, 512)
    while (tile > 8 and
           _vmem_estimate_bytes(tile, K, hidden, x_itemsize, w_itemsize) > budget_bytes):
        tile = max(8, (tile // 2) // 8 * 8)
    return tile


# ----------------------------------------------------------------------------
# Pallas kernel: patch matmul + (bias-folded) position embedding, fused
# ----------------------------------------------------------------------------
def _patch_embed_kernel(x_ref, w_ref, pos_ref, o_ref):
    # x:   (tile_np, K)      flattened patches for one batch element / row tile
    # w:   (K, hidden)       flattened conv weight (block index constant -> resident)
    # pos: (tile_np, hidden) position rows with the conv bias pre-folded in
    # o:   (tile_np, hidden)
    acc = jnp.dot(x_ref[...], w_ref[...], preferred_element_type=jnp.float32)
    o_ref[...] = (acc + pos_ref[...]).astype(o_ref.dtype)


def patch_embed_pallas(pixel_values, w, pos_patch, patch_size: int, hidden: int,
                       use_bf16: bool = False):
    """Conv2d(C, hidden, kernel=P, stride=P) as a tiled MXU matmul with the
    bias + patch position embedding fused into the epilogue.
    Returns (B, num_patches, hidden) float32."""
    B, C, H, W = pixel_values.shape
    P = patch_size
    nh, nw = H // P, W // P
    num_patches = nh * nw
    K = C * P * P

    # im2col glue (XLA, folded under jit).  Flatten each patch in (C, P, P)
    # order so it matches the flattened conv weight.
    # TODO(synk): in-kernel patchification to avoid materializing this
    # transposed (B, Np, K) copy in HBM.
    x = pixel_values.reshape(B, C, nh, P, nw, P)
    x = x.transpose(0, 2, 4, 1, 3, 5).reshape(B, num_patches, K)

    if use_bf16:
        # bf16 MXU operands, f32 accumulation — halves x / weight DMA bytes.
        x = x.astype(jnp.bfloat16)
        w = w.astype(jnp.bfloat16)

    tile_np = _pick_tile_np(num_patches, K, hidden,
                            x.dtype.itemsize, w.dtype.itemsize)
    grid_m = pl.cdiv(num_patches, tile_np)          # trailing rows handled (masked)
    grid = (grid_m, B)                               # batch INNERMOST: weight/pos stay resident

    est = _vmem_estimate_bytes(tile_np, K, hidden, x.dtype.itemsize, w.dtype.itemsize)
    # Only raise the scoped-VMEM limit when needed (smallest default ~16 MiB on
    # v5e); cap well under v7x's 64 MiB physical.
    vmem_limit = None if est < 12 * 1024 * 1024 else min(est * 3 // 2, 48 * 1024 * 1024)

    # NOTE: at ViT scale, consider pipeline_mode=pl.Buffered(1) on the weight
    # spec to single-buffer the constant block and reclaim K*hidden*itemsize
    # bytes of VMEM (kept default here for maximum lowering compatibility).
    out = pl.pallas_call(
        _patch_embed_kernel,
        out_shape=jax.ShapeDtypeStruct((B, num_patches, hidden), jnp.float32),
        grid=grid,
        in_specs=[
            pl.BlockSpec((None, tile_np, K), lambda m, b: (b, m, 0)),    # patches
            pl.BlockSpec((K, hidden), lambda m, b: (0, 0)),              # weight (resident)
            pl.BlockSpec((tile_np, hidden), lambda m, b: (m, 0)),        # pos+bias rows
        ],
        out_specs=pl.BlockSpec((None, tile_np, hidden), lambda m, b: (b, m, 0)),
        compiler_params=pltpu.CompilerParams(
            dimension_semantics=("parallel", "parallel"),
            vmem_limit_bytes=vmem_limit),
    )(x, w, pos_patch)
    return out


def patch_embed_xla(pixel_values, w, pos_patch, patch_size: int, hidden: int):
    """Pure-XLA fallback for tiny shapes (pallas fixed cost dominates there)."""
    B, C, H, W = pixel_values.shape
    P = patch_size
    nh, nw = H // P, W // P
    x = pixel_values.reshape(B, C, nh, P, nw, P)
    x = x.transpose(0, 2, 4, 1, 3, 5).reshape(B, nh * nw, -1)
    return jnp.einsum("bpk,kh->bph", x, w) + pos_patch[None]


# ----------------------------------------------------------------------------
# Forward (mirrors TaskEmbeddings.forward)
# ----------------------------------------------------------------------------
@functools.partial(jax.jit,
                   static_argnames=("patch_size", "hidden", "use_bf16", "impl"))
def task_embeddings_forward(pixel_values, task_tokens, argument_tokens,
                            params, patch_size: int, hidden: int,
                            use_bf16: bool = False, impl: str = "auto"):
    B, C, H, W = pixel_values.shape
    num_patches = (H // patch_size) * (W // patch_size)

    if impl == "auto":
        # Below ~64K output elements the pallas_call fixed cost + glue dominate.
        impl = "xla" if (num_patches * hidden < 64 * 1024) else "pallas"

    if impl == "pallas":
        patch_emb = patch_embed_pallas(pixel_values, params["w"],
                                       params["pos_patch"], patch_size, hidden,
                                       use_bf16=use_bf16)          # (B, Np, H)
    else:
        patch_emb = patch_embed_xla(pixel_values, params["w"],
                                    params["pos_patch"], patch_size, hidden)

    # Tiny prefix (cls + interleaved task/argument tokens): a few rows per
    # batch element, handled in plain JAX with its slice of the pos table.
    cls_tokens = jnp.broadcast_to(
        params["cls_token"], (B,) + params["cls_token"].shape[1:])
    pieces = [cls_tokens]
    for t, a in zip(task_tokens, argument_tokens):
        pieces.append(t)
        pieces.append(a)
    prefix = jnp.concatenate(pieces, axis=1) + params["pos_prefix"][None, :, :]

    # cat((cls, task0, arg0, ..., patches), dim=1), pos already added everywhere.
    return jnp.concatenate([prefix, patch_emb], axis=1)             # (B, T, H)


# ----------------------------------------------------------------------------
# Main
# ----------------------------------------------------------------------------
if __name__ == "__main__":
    # Small shapes consistent with the module's forward.
    B, C, Himg, Wimg = 2, 4, 16, 16
    patch_size = 8
    hidden = 32
    num_tasks = 1
    num_cls_tokens = 1
    use_sinusoidal = True

    nh, nw = Himg // patch_size, Wimg // patch_size
    num_patches = nh * nw                                        # 4
    num_prefix = num_cls_tokens + 2 * num_tasks                  # 3
    num_tokens = num_prefix + num_patches                        # 7

    key = jax.random.PRNGKey(0)
    k_px, k_w, k_b, k_cls, k_task, k_arg = jax.random.split(key, 6)

    pixel_values = jax.random.normal(k_px, (B, C, Himg, Wimg), jnp.float32)

    conv_weight = 0.02 * jax.random.normal(
        k_w, (hidden, C, patch_size, patch_size), jnp.float32)
    conv_bias = 0.01 * jax.random.normal(k_b, (hidden,), jnp.float32)
    cls_token = jax.random.normal(k_cls, (1, num_cls_tokens, hidden), jnp.float32)
    pos_table = (create_sinusoidal_embeddings(num_tokens, hidden)
                 if use_sinusoidal
                 else jnp.zeros((num_tokens, hidden), jnp.float32))

    params = prepare_params(conv_weight, conv_bias, cls_token, pos_table,
                            num_prefix_tokens=num_prefix)

    task_tokens = [jax.random.normal(k_task, (B, 1, hidden), jnp.float32)]
    argument_tokens = [jax.random.normal(k_arg, (B, 1, hidden), jnp.float32)]

    # Force the Pallas path so the kernel is actually exercised at test shapes
    # (production dispatch would use impl="auto").
    out = task_embeddings_forward(pixel_values, task_tokens, argument_tokens,
                                  params, patch_size, hidden,
                                  use_bf16=False, impl="pallas")
    out = jax.block_until_ready(out)
    assert out.shape == (B, num_tokens, hidden), out.shape

    # Pure-JAX reference (same math as the PyTorch module).
    x_ref = pixel_values.reshape(B, C, nh, patch_size, nw, patch_size)
    x_ref = x_ref.transpose(0, 2, 4, 1, 3, 5).reshape(B, num_patches, -1)
    emb_ref = jnp.einsum("bpk,kh->bph", x_ref,
                         conv_weight.reshape(hidden, -1).T) + conv_bias
    pieces = [jnp.broadcast_to(cls_token, (B, num_cls_tokens, hidden)),
              task_tokens[0], argument_tokens[0], emb_ref]
    ref = jnp.concatenate(pieces, axis=1) + pos_table[None]
    np.testing.assert_allclose(np.asarray(out), np.asarray(ref),
                               rtol=1e-3, atol=1e-3)

    print("KERNEL_OK")
</pallas_src>

<mosaic_0001>
module attributes {stable_mosaic.version = 11 : i64} {
  func.func @_patch_embed_kernel(%arg0: i32, %arg1: i32, %arg2: memref<1x4x256xf32, #tpu.memory_space<vmem>>, %arg3: memref<256x32xf32, #tpu.memory_space<vmem>>, %arg4: memref<4x32xf32, #tpu.memory_space<vmem>>, %arg5: memref<1x4x32xf32, #tpu.memory_space<vmem>>) attributes {dimension_semantics = [#tpu.dimension_semantics<parallel>, #tpu.dimension_semantics<parallel>], iteration_bounds = array<i64: 1, 2>, scalar_prefetch = 0 : i64, scratch_operands = 0 : i64, tpu.core_type = #tpu.core_type<tc>, window_params = [{transform_indices = @transform_0, window_bounds = array<i64: 1, 4, 256>}, {pipeline_mode = #tpu.pipeline_mode<synchronous>, transform_indices = @transform_1, window_bounds = array<i64: 256, 32>}, {transform_indices = @transform_2, window_bounds = array<i64: 4, 32>}, {transform_indices = @transform_3, window_bounds = array<i64: 1, 4, 32>}]} {
    %c0 = arith.constant 0 : index
    %c0_0 = arith.constant 0 : index
    %c0_1 = arith.constant 0 : index
    %0 = vector.load %arg2[%c0, %c0_0, %c0_1] : memref<1x4x256xf32, #tpu.memory_space<vmem>>, vector<1x4x256xf32>
    %1 = vector.shape_cast %0 : vector<1x4x256xf32> to vector<4x256xf32>
    %c0_2 = arith.constant 0 : index
    %c0_3 = arith.constant 0 : index
    %2 = vector.load %arg3[%c0_2, %c0_3] : memref<256x32xf32, #tpu.memory_space<vmem>>, vector<256x32xf32>
    %cst = arith.constant dense<0.000000e+00> : vector<4x32xf32>
    %3 = tpu.matmul %1, %2, %cst {dimension_numbers = #tpu.dot_dimension_numbers<[1], [0], [0], [1], [0, 0, 1, 1], [], []>} : vector<4x256xf32>, vector<256x32xf32>, vector<4x32xf32> -> vector<4x32xf32>
    %c0_4 = arith.constant 0 : index
    %c0_5 = arith.constant 0 : index
    %4 = vector.load %arg4[%c0_4, %c0_5] : memref<4x32xf32, #tpu.memory_space<vmem>>, vector<4x32xf32>
    %5 = arith.addf %3, %4 : vector<4x32xf32>
    %c0_6 = arith.constant 0 : index
    %c0_7 = arith.constant 0 : index
    %c0_8 = arith.constant 0 : index
    %6 = vector.load %arg5[%c0_6, %c0_7, %c0_8] : memref<1x4x32xf32, #tpu.memory_space<vmem>>, vector<1x4x32xf32>
    %7 = vector.shape_cast %6 : vector<1x4x32xf32> to vector<4x32xf32>
    %8 = vector.shape_cast %5 : vector<4x32xf32> to vector<1x4x32xf32>
    tpu.vector_store %arg5[%c0_6, %c0_7, %c0_8], %8 {strides = array<i32>} : memref<1x4x32xf32, #tpu.memory_space<vmem>>, vector<1x4x32xf32>,
    return
  }
  func.func @transform_0(%arg0: i32, %arg1: i32) -> (i32, i32, i32) {
    %c0_i32 = arith.constant 0 : i32
    %c0_i32_0 = arith.constant 0 : i32
    return %arg1, %arg0, %c0_i32 : i32, i32, i32
  }
  func.func @transform_1(%arg0: i32, %arg1: i32) -> (i32, i32) {
    %c0_i32 = arith.constant 0 : i32
    %c0_i32_0 = arith.constant 0 : i32
    %c0_i32_1 = arith.constant 0 : i32
    return %c0_i32, %c0_i32_0 : i32, i32
  }
  func.func @transform_2(%arg0: i32, %arg1: i32) -> (i32, i32) {
    %c0_i32 = arith.constant 0 : i32
    %c0_i32_0 = arith.constant 0 : i32
    return %arg0, %c0_i32 : i32, i32
  }
  func.func @transform_3(%arg0: i32, %arg1: i32) -> (i32, i32, i32) {
    %c0_i32 = arith.constant 0 : i32
    %c0_i32_0 = arith.constant 0 : i32
    return %arg1, %arg0, %c0_i32 : i32, i32, i32
  }
}

</mosaic_0001>

<bundles_post_ra>
// kernel: task_embeddings_forward.1
= control target key start
LH: loop header
LB: loop body
LE: loop exit
PB: predicated region body
PF: predicated region fallthrough
CT: control target
= control target key end

     0   :  { %s573_s12 = smov 0   ;;  %s575_s13 = smov 0   ;;  %s709_s0 = inlined_call_operand.vmem [shape: f32[2,4,256], index: 0, kind: input, shape index: {}]   ;;  %s710_s1 = inlined_call_operand.vmem [shape: f32[256,32], index: 1, kind: input, shape index: {}]   ;;  %s711_s2 = inlined_call_operand.vmem [shape: f32[4,32], index: 2, kind: input, shape index: {}]   ;;  %s712_s3 = inlined_call_operand.vmem [shape: f32[2,4,32], index: 3, kind: output, shape index: {}]  }
   0x1   :  { %s577_s14 = smov 0  }
   0x2 LB: > { %s22_s15 = sadd.s32 1, %s547_s13  ;;  %p430_p0 = scmp.ge.s32.totalorder %s551_s14, 1  ;;  %s551_s14 = sphi %s577_s14, %s13_s14   ;;  %s547_s13 = sphi %s575_s13, %s714_s13   ;;  %s543_s12 = sphi %s573_s12, %s713_s12  }
   0x3   : > { %p23_p1 = scmp.ge.s32.totalorder %s22_s15, 2  ;;  %p166_p2 = scmp.lt.s32.totalorder %s551_s14, 3 }
   0x5   : > { %s716_s15 = smov (%p23_p1, %s22_s15), 0  ;;  %p167_p3 = pnand %p430_p0, %p166_p2 }
   0x6   : > { %v237_v0 = vld [vmem:[%s710_s1 + $0x80] sm:$0xff] (!%p167_p3)  ;;  %v238_v1 = vld [vmem:[%s710_s1 + $0x88] sm:$0xff] (!%p167_p3)  ;;  %p200_p4 = scmp.lt.s32.totalorder (!%p167_p3), %s543_s12, 1  ;;  %v239_v5 = vld [vmem:[%s710_s1 + $0x90] sm:$0xff] (!%p167_p3)  ;;  %vm327_vm0 = vcmask (!%p167_p3), 257024  }
   0x7   : > { %170 = sbr.rel (%p167_p3) target bundleno = 259 (0x103), region = 32  ;;  %v221_v2 = vld [vmem:[%s710_s1] sm:$0xff] (!%p167_p3)  ;;  %v472_v3 = vpack.c.bf16 (!%p167_p3), %v238_v1, %v237_v0  ;;  %v222_v4 = vld [vmem:[%s710_s1 + $0x8] sm:$0xff] (!%p167_p3)  ;;  %v240_v6 = vld [vmem:[%s710_s1 + $0x98] sm:$0xff] (!%p167_p3) }
   0x8   : > { %v474_v7 = vpack.c.bf16 (!%p167_p3), %v222_v4, %v221_v2  ;;  %v476_v8 = vpack.c.bf16 (!%p167_p3), %v240_v6, %v239_v5  ;;  %v223_v9 = vld [vmem:[%s710_s1 + $0x10] sm:$0xff] (!%p167_p3)  ;;  %v224_v10 = vld [vmem:[%s710_s1 + $0x18] sm:$0xff] (!%p167_p3)  ;;  %v241_v11 = vld [vmem:[%s710_s1 + $0xa0] sm:$0xff] (!%p167_p3) }
   0x9   : > { %473 = vmatprep.subr.bf16.mxu0 (!%p167_p3), %v472_v3  ;;  %v242_v12 = vld [vmem:[%s710_s1 + $0xa8] sm:$0xff] (!%p167_p3)  ;;  %v478_v13 = vpack.c.bf16 (!%p167_p3), %v224_v10, %v223_v9  ;;  %v225_v15 = vld [vmem:[%s710_s1 + $0x20] sm:$0xff] (!%p167_p3)  ;;  %v243_v17 = vld [vmem:[%s710_s1 + $0xb0] sm:$0xff] (!%p167_p3) }
   0xa   : > { %475 = vmatpush3.bf16.msra.mxu0 (!%p167_p3), %v474_v7  ;;  %v480_v14 = vpack.c.bf16 (!%p167_p3), %v242_v12, %v241_v11  ;;  %v226_v16 = vld [vmem:[%s710_s1 + $0x28] sm:$0xff] (!%p167_p3)  ;;  %v244_v18 = vld [vmem:[%s710_s1 + $0xb8] sm:$0xff] (!%p167_p3)  ;;  %v227_v21 = vld [vmem:[%s710_s1 + $0x30] sm:$0xff] (!%p167_p3) }
   0xb   : > { %477 = vmatprep.subr.bf16.mxu0 (!%p167_p3), %v476_v8  ;;  %v482_v19 = vpack.c.bf16 (!%p167_p3), %v226_v16, %v225_v15  ;;  %v484_v20 = vpack.c.bf16 (!%p167_p3), %v244_v18, %v243_v17  ;;  %v228_v22 = vld [vmem:[%s710_s1 + $0x38] sm:$0xff] (!%p167_p3)  ;;  %v245_v23 = vld [vmem:[%s710_s1 + $0xc0] sm:$0xff] (!%p167_p3)  ;;  %v246_v24 = vld [vmem:[%s710_s1 + $0xc8] sm:$0xff] (!%p167_p3) }
   0xc   : > { %v486_v27 = vpack.c.bf16 (!%p167_p3), %v228_v22, %v227_v21  ;;  %v488_v28 = vpack.c.bf16 (!%p167_p3), %v246_v24, %v245_v23  ;;  %v229_v29 = vld [vmem:[%s710_s1 + $0x40] sm:$0xff] (!%p167_p3)  ;;  %v230_v30 = vld [vmem:[%s710_s1 + $0x48] sm:$0xff] (!%p167_p3)  ;;  %v247_v31 = vld [vmem:[%s710_s1 + $0xd0] sm:$0xff] (!%p167_p3) }
   0xd   : > { %v248_v32 = vld [vmem:[%s710_s1 + $0xd8] sm:$0xff] (!%p167_p3)  ;;  %v490_v33 = vpack.c.bf16 (!%p167_p3), %v230_v30, %v229_v29  ;;  %v231_v35 = vld [vmem:[%s710_s1 + $0x50] sm:$0xff] (!%p167_p3)  ;;  %v249_v37 = vld [vmem:[%s710_s1 + $0xe0] sm:$0xff] (!%p167_p3) }
   0xe   : > { %s718_s12 = smov (!%p200_p4, %s543_s12), 1  ;;  %479 = vmatpush3.bf16.msra.mxu0 %v478_v13  ;;  %v492_v34 = vpack.c.bf16 %v248_v32, %v247_v31  ;;  %v232_v36 = vld [vmem:[%s710_s1 + $0x58] sm:$0xff]  ;;  %v250_v38 = vld [vmem:[%s710_s1 + $0xe8] sm:$0xff]  ;;  %v233_v41 = vld [vmem:[%s710_s1 + $0x60] sm:$0xff] }
   0xf   : > { %s436_s9 = sshll.u32 %s718_s12, 3  ;;  %481 = vmatprep.subr.bf16.mxu0 %v480_v14  ;;  %v494_v39 = vpack.c.bf16 %v232_v36, %v231_v35  ;;  %v496_v40 = vpack.c.bf16 %v250_v38, %v249_v37  ;;  %v234_v42 = vld [vmem:[%s710_s1 + $0x68] sm:$0xff]  ;;  %v251_v43 = vld [vmem:[%s710_s1 + $0xf0] sm:$0xff]  ;;  %v252_v44 = vld [vmem:[%s710_s1 + $0xf8] sm:$0xff]  ;;  %s433_s11 = sshll.u32 %s718_s12, 2 }
  0x10   : > { %s208_s24 = scalar_lea.vmem %s709_s0, %s436_s9  ;;  %v498_v45 = vpack.c.bf16 %v234_v42, %v233_v41  ;;  %v500_v46 = vpack.c.bf16 %v252_v44, %v251_v43  ;;  %v235_v47 = vld [vmem:[%s710_s1 + $0x70] sm:$0xff]  ;;  %v236_v48 = vld [vmem:[%s710_s1 + $0x78] sm:$0xff]  ;;  %v253_v51 = vld [vmem:[%s711_s2] sm:$0xf]  ;;  %s219_s20 = scalar_lea.vmem %s712_s3, %s433_s11 }
  0x11   : > { %v220_v25 = vld [vmem:[%s208_s24] sm:$0xff]  ;;  %v502_v49 = vpack.c.bf16 %v236_v48, %v235_v47 }
  0x12   : > { %v255_v26 = vcombine.high %v220_v25, %v220_v25  ;;  %483 = vmatpush3.bf16.msra.mxu0 %v482_v19 }
  0x13   : > { %485 = vmatprep.subr.bf16.mxu0 %v484_v20 }
  0x14   : > { %321 = vmatprep.mubr.f32.mxu0 %v255_v26 }
  0x16   : > { %487 = vmatpush3.bf16.msra.mxu0 %v486_v27 }
  0x17   : > { %489 = vmatprep.subr.bf16.mxu0 %v488_v28 }
  0x1a   : > { %491 = vmatpush3.bf16.msra.mxu0 %v490_v33 }
  0x1b   : > { %493 = vmatprep.subr.bf16.mxu0 %v492_v34 }
  0x1e   : > { %495 = vmatpush3.bf16.msra.mxu0 %v494_v39 }
  0x1f   : > { %497 = vmatprep.subr.bf16.mxu0 %v496_v40 }
  0x22   : > { %499 = vmatpush3.bf16.msra.mxu0 %v498_v45 }
  0x23   : > { %501 = vmatprep.subr.bf16.mxu0 %v500_v46 }
  0x26   : > { %503 = vmatpush3.bf16.msra.mxu0 %v502_v49 }
  0x29   : > { %322 = vmatmul.mubr.f32.vlgmr.msra.gmra.mrb[0].mxu0 %v220_v25 }
  0xfc   : > { %v469_v50 = vpop.f32.mrb[0].mxu0 }
  0xfd   : > { %v470_v52 = vpop.f32.mrb[1].mxu0 }
  0xfe   : > { %v471_v53 = vadd.f32 %v470_v52, %v469_v50 }
 0x100   : > { %v324_v54 = vadd.f32 %v471_v53, %v253_v51 }
 0x102   : > { %328 = vst.msk [vmem:[%s219_s20] sm:$0xf] %vm327_vm0, %v324_v54 }
 0x103 PF: > { %s13_s14 = sadd.s32 1, %s551_s14   ;;  %s713_s12 = smov %s547_s13 }
 0x104   : > { %p10_p5 = scmp.ge.s32.totalorder %s13_s14, 4   ;;  %s714_s13 = smov %s716_s15 }
 0x106   :  { %12 = sbr.rel (!%p10_p5) target bundleno = 2 (0x2), region = 65 }

</bundles_post_ra>
